<compile_context>
chip_gen: v6e
topology: v6e:2x2x1
jax: 0.10.0
libtpu: 0.0.40
codegen_flags: <defaults>
</compile_context>

<pallas_src>
import math

import jax
import jax.numpy as jnp
from jax.experimental import pallas as pl
from jax.experimental.pallas import tpu as pltpu

LOG_STD_MAX = 2.0
LOG_STD_MIN = -20.0

HIDDEN_PAD = 128   # hidden lane width (real hidden size <= 128, zero padded)
LANE = 128         # output slab / head lane width


def _policy_kernel(action_scale, act_dim):
    """Kernel closure with python-constant action_scale and action dim baked in."""
    A = int(act_dim)
    half_log_2pi = 0.5 * math.log(2.0 * math.pi)

    def kernel(x_ref, eps_ref, w1_ref, b1_ref, w2_ref, b2_ref,
               wh_ref, bh_ref, out_ref):
        # ---- MLP trunk: two hidden layers, ReLU (use_output_layer=False) ----
        # bf16 operands for the MXU, f32 accumulation. (Review note: bf16 gives
        # ~3-digit parity vs the f32 PyTorch reference; acceptable for RL sampling.)
        x = x_ref[...].astype(jnp.bfloat16)
        h = jnp.dot(x, w1_ref[...], preferred_element_type=jnp.float32) + b1_ref[...]
        h = jnp.maximum(h, 0.0)
        h = jnp.dot(h.astype(jnp.bfloat16), w2_ref[...],
                    preferred_element_type=jnp.float32) + b2_ref[...]
        h = jnp.maximum(h, 0.0)

        # ---- fused heads: columns [0:A] = mu, [A:2A] = raw log_std ----
        head = jnp.dot(h.astype(jnp.bfloat16), wh_ref[...],
                       preferred_element_type=jnp.float32) + bh_ref[...]
        mu = head[:, :A]
        log_std = jnp.tanh(head[:, A:2 * A])
        log_std = LOG_STD_MIN + 0.5 * (LOG_STD_MAX - LOG_STD_MIN) * (log_std + 1.0)
        std = jnp.exp(log_std)

        # ---- reparameterized sample: pi = mu + std * eps ----
        eps = eps_ref[...]
        pi = mu + std * eps

        # ---- fused tanh over [mu | pi] (one EUP pass over 2A lanes) ----
        t = jnp.tanh(jnp.concatenate([mu, pi], axis=-1))
        pi_t = t[:, A:2 * A]

        # ---- Normal(mu, std).log_prob(pi).sum(-1) + tanh squashing correction,
        #      fused into a single axis=-1 reduction. (pi - mu)/std == eps. ----
        # clip_but_pass_gradient(1 - pi^2, 0, 1): forward value is the plain clip.
        # TODO(synk): straight-through gradient of clip_but_pass_gradient is not
        # reproduced (no custom VJP); forward-only use intended.
        one_minus_pi2 = jnp.clip(1.0 - pi_t * pi_t, 0.0, 1.0)
        per_dim = (-0.5 * eps * eps - log_std - half_log_2pi
                   - jnp.log(one_minus_pi2 + 1e-6))
        log_pi = jnp.sum(per_dim, axis=-1, keepdims=True)

        # ---- log_type == 'log' branch: scale squashed actions (mu|pi together) ----
        # TODO(synk): 'log-q' (Tsallis) branch not implemented; module default is 'log'.
        scaled = t * action_scale

        # log_pi as a bf16 hi/lo pair: lane 2A = bf16(log_pi), lane 2A+1 = bf16(residual).
        lp_hi = log_pi.astype(jnp.bfloat16).astype(jnp.float32)
        lp_lo = log_pi - lp_hi

        # ---- one lane-dense store: [mu | pi | lp_hi | lp_lo | zeros] -> (TB, 128) bf16
        pad = jnp.zeros((scaled.shape[0], LANE - 2 * A - 2), jnp.float32)
        slab = jnp.concatenate([scaled, lp_hi, lp_lo, pad], axis=-1)
        out_ref[...] = slab.astype(out_ref.dtype)

    return kernel


def pack_params(params):
    """Zero-pad lane dims to 128, fuse the two heads, pre-cast weights to bf16.

    Done once outside the kernel / per training step, not per call.
    """
    w1, b1 = params["w1"], params["b1"]
    w2, b2 = params["w2"], params["b2"]
    wmu, bmu = params["wmu"], params["bmu"]
    wls, bls = params["wls"], params["bls"]

    d_in, h1 = w1.shape
    _, h2 = w2.shape
    _, a = wmu.shape
    assert h1 <= HIDDEN_PAD and h2 <= HIDDEN_PAD and 2 * a + 2 <= LANE

    w1p = jnp.zeros((d_in, HIDDEN_PAD), jnp.float32).at[:, :h1].set(w1)
    b1p = jnp.zeros((1, HIDDEN_PAD), jnp.float32).at[:, :h1].set(b1)
    w2p = jnp.zeros((HIDDEN_PAD, HIDDEN_PAD), jnp.float32).at[:h1, :h2].set(w2)
    b2p = jnp.zeros((1, HIDDEN_PAD), jnp.float32).at[:, :h2].set(b2)
    whp = (jnp.zeros((HIDDEN_PAD, LANE), jnp.float32)
           .at[:h2, :a].set(wmu)
           .at[:h2, a:2 * a].set(wls))
    bhp = (jnp.zeros((1, LANE), jnp.float32)
           .at[:, :a].set(bmu)
           .at[:, a:2 * a].set(bls))

    return {
        "w1": w1p.astype(jnp.bfloat16), "b1": b1p,
        "w2": w2p.astype(jnp.bfloat16), "b2": b2p,
        "whead": whp.astype(jnp.bfloat16), "bhead": bhp,
        "act_dim": a,
    }


def _round_up(n, m):
    return ((n + m - 1) // m) * m


def _pick_batch_tile(batch):
    """Batch tile: single step for tiny B; >=2 steps (v7x 2-TC split) for mid B;
    2048-row tiles (>=3 steps, low per-step overhead) for large B."""
    if batch <= 16:
        return max(8, _round_up(batch, 8))
    if batch <= 4096:
        return _round_up(-(-batch // 2), 16)   # >=2 grid steps, bf16-friendly sublanes
    return 2048


def reparam_gaussian_policy_forward(x, packed, eps, action_scale=1.0):
    """Forward pass. x: (B, D_in) f32, eps: (B, A) f32 standard-normal noise.

    Returns (mu, pi, log_pi) with shapes (B, A), (B, A), (B,), all float32.
    """
    B, d_in = x.shape
    A = int(packed["act_dim"])

    TB = _pick_batch_tile(B)
    B_pad = _round_up(B, TB)
    if B_pad != B:
        x = jnp.pad(x, ((0, B_pad - B), (0, 0)))
        eps = jnp.pad(eps, ((0, B_pad - B), (0, 0)))

    slab = pl.pallas_call(
        _policy_kernel(float(action_scale), A),
        out_shape=jax.ShapeDtypeStruct((B_pad, LANE), jnp.bfloat16),
        grid=(B_pad // TB,),
        in_specs=[
            pl.BlockSpec((TB, d_in), lambda i: (i, 0)),               # x   (streamed)
            pl.BlockSpec((TB, A), lambda i: (i, 0)),                  # eps (streamed)
            pl.BlockSpec((d_in, HIDDEN_PAD), lambda i: (0, 0)),       # w1  (resident)
            pl.BlockSpec((1, HIDDEN_PAD), lambda i: (0, 0)),          # b1
            pl.BlockSpec((HIDDEN_PAD, HIDDEN_PAD), lambda i: (0, 0)), # w2
            pl.BlockSpec((1, HIDDEN_PAD), lambda i: (0, 0)),          # b2
            pl.BlockSpec((HIDDEN_PAD, LANE), lambda i: (0, 0)),       # fused head W
            pl.BlockSpec((1, LANE), lambda i: (0, 0)),                # fused head b
        ],
        out_specs=pl.BlockSpec((TB, LANE), lambda i: (i, 0)),
        compiler_params=pltpu.CompilerParams(
            dimension_semantics=("parallel",)),                       # v7x 2-TC split
    )(x, eps, packed["w1"], packed["b1"], packed["w2"], packed["b2"],
      packed["whead"], packed["bhead"])

    mu = slab[:B, :A].astype(jnp.float32)
    pi = slab[:B, A:2 * A].astype(jnp.float32)
    log_pi = (slab[:B, 2 * A].astype(jnp.float32)
              + slab[:B, 2 * A + 1].astype(jnp.float32))
    return mu, pi, log_pi


def init_params(key, input_size, output_size, hidden_sizes=(64, 64)):
    """Deterministic synthetic parameter init (same shapes as the nn.Module)."""
    sizes = [input_size] + list(hidden_sizes)
    params = {}
    keys = jax.random.split(key, 2 * len(hidden_sizes) + 4)
    ki = 0
    for i, (d_in, d_out) in enumerate(zip(sizes[:-1], sizes[1:])):
        scale = 1.0 / jnp.sqrt(d_in)
        params[f"w{i+1}"] = jax.random.uniform(
            keys[ki], (d_in, d_out), jnp.float32, -scale, scale); ki += 1
        params[f"b{i+1}"] = jax.random.uniform(
            keys[ki], (1, d_out), jnp.float32, -scale, scale); ki += 1
    h_last = hidden_sizes[-1]
    scale = 1.0 / jnp.sqrt(h_last)
    params["wmu"] = jax.random.uniform(
        keys[ki], (h_last, output_size), jnp.float32, -scale, scale); ki += 1
    params["bmu"] = jax.random.uniform(
        keys[ki], (1, output_size), jnp.float32, -scale, scale); ki += 1
    params["wls"] = jax.random.uniform(
        keys[ki], (h_last, output_size), jnp.float32, -scale, scale); ki += 1
    params["bls"] = jax.random.uniform(
        keys[ki], (1, output_size), jnp.float32, -scale, scale); ki += 1
    return params


if __name__ == "__main__":
    key = jax.random.PRNGKey(0)
    k_param, k_x, k_eps = jax.random.split(key, 3)

    batch = 8
    input_size = 16     # observation dim
    output_size = 8     # action dim
    hidden_sizes = (64, 64)
    action_scale = 1.0

    raw_params = init_params(k_param, input_size, output_size, hidden_sizes)
    packed = pack_params(raw_params)

    x = jax.random.normal(k_x, (batch, input_size), jnp.float32)
    eps = jax.random.normal(k_eps, (batch, output_size), jnp.float32)

    mu, pi, log_pi = reparam_gaussian_policy_forward(x, packed, eps, action_scale)
    jax.block_until_ready((mu, pi, log_pi))

    assert mu.shape == (batch, output_size)
    assert pi.shape == (batch, output_size)
    assert log_pi.shape == (batch,)
    assert bool(jnp.all(jnp.isfinite(mu)))
    assert bool(jnp.all(jnp.isfinite(pi)))
    assert bool(jnp.all(jnp.isfinite(log_pi)))
    # tanh-squashed actions must stay within the action scale
    assert bool(jnp.all(jnp.abs(mu) <= action_scale + 1e-5))
    assert bool(jnp.all(jnp.abs(pi) <= action_scale + 1e-5))
    print("KERNEL_OK")
</pallas_src>

<mosaic_0001>
module attributes {stable_mosaic.version = 11 : i64} {
  func.func @kernel(%arg0: i32, %arg1: memref<8x16xf32, #tpu.memory_space<vmem>>, %arg2: memref<8x8xf32, #tpu.memory_space<vmem>>, %arg3: memref<16x128xbf16, #tpu.memory_space<vmem>>, %arg4: memref<1x128xf32, #tpu.memory_space<vmem>>, %arg5: memref<128x128xbf16, #tpu.memory_space<vmem>>, %arg6: memref<1x128xf32, #tpu.memory_space<vmem>>, %arg7: memref<128x128xbf16, #tpu.memory_space<vmem>>, %arg8: memref<1x128xf32, #tpu.memory_space<vmem>>, %arg9: memref<8x128xbf16, #tpu.memory_space<vmem>>) attributes {dimension_semantics = [#tpu.dimension_semantics<parallel>], iteration_bounds = array<i64: 1>, scalar_prefetch = 0 : i64, scratch_operands = 0 : i64, tpu.core_type = #tpu.core_type<tc>, window_params = [{transform_indices = @transform_0, window_bounds = array<i64: 8, 16>}, {transform_indices = @transform_1, window_bounds = array<i64: 8, 8>}, {pipeline_mode = #tpu.pipeline_mode<synchronous>, transform_indices = @transform_2, window_bounds = array<i64: 16, 128>}, {pipeline_mode = #tpu.pipeline_mode<synchronous>, transform_indices = @transform_3, window_bounds = array<i64: 1, 128>}, {pipeline_mode = #tpu.pipeline_mode<synchronous>, transform_indices = @transform_4, window_bounds = array<i64: 128, 128>}, {pipeline_mode = #tpu.pipeline_mode<synchronous>, transform_indices = @transform_5, window_bounds = array<i64: 1, 128>}, {pipeline_mode = #tpu.pipeline_mode<synchronous>, transform_indices = @transform_6, window_bounds = array<i64: 128, 128>}, {pipeline_mode = #tpu.pipeline_mode<synchronous>, transform_indices = @transform_7, window_bounds = array<i64: 1, 128>}, {transform_indices = @transform_8, window_bounds = array<i64: 8, 128>}]} {
    %c0 = arith.constant 0 : index
    %c0_0 = arith.constant 0 : index
    %0 = vector.load %arg1[%c0, %c0_0] : memref<8x16xf32, #tpu.memory_space<vmem>>, vector<8x16xf32>
    %1 = arith.truncf %0 : vector<8x16xf32> to vector<8x16xbf16>
    %c0_1 = arith.constant 0 : index
    %c0_2 = arith.constant 0 : index
    %2 = vector.load %arg3[%c0_1, %c0_2] : memref<16x128xbf16, #tpu.memory_space<vmem>>, vector<16x128xbf16>
    %cst = arith.constant dense<0.000000e+00> : vector<8x128xf32>
    %3 = tpu.matmul %1, %2, %cst {dimension_numbers = #tpu.dot_dimension_numbers<[1], [0], [0], [1], [0, 0, 1, 1], [], []>} : vector<8x16xbf16>, vector<16x128xbf16>, vector<8x128xf32> -> vector<8x128xf32>
    %c0_3 = arith.constant 0 : index
    %c0_4 = arith.constant 0 : index
    %4 = vector.load %arg4[%c0_3, %c0_4] : memref<1x128xf32, #tpu.memory_space<vmem>>, vector<1x128xf32>
    %5 = vector.broadcast %4 : vector<1x128xf32> to vector<8x128xf32>
    %6 = arith.addf %3, %5 : vector<8x128xf32>
    %cst_5 = arith.constant 0.000000e+00 : f32
    %7 = vector.broadcast %cst_5 : f32 to vector<8x128xf32>
    %8 = arith.maximumf %6, %7 : vector<8x128xf32>
    %9 = arith.truncf %8 : vector<8x128xf32> to vector<8x128xbf16>
    %c0_6 = arith.constant 0 : index
    %c0_7 = arith.constant 0 : index
    %10 = vector.load %arg5[%c0_6, %c0_7] : memref<128x128xbf16, #tpu.memory_space<vmem>>, vector<128x128xbf16>
    %cst_8 = arith.constant dense<0.000000e+00> : vector<8x128xf32>
    %11 = tpu.matmul %9, %10, %cst_8 {dimension_numbers = #tpu.dot_dimension_numbers<[1], [0], [0], [1], [0, 0, 1, 1], [], []>} : vector<8x128xbf16>, vector<128x128xbf16>, vector<8x128xf32> -> vector<8x128xf32>
    %c0_9 = arith.constant 0 : index
    %c0_10 = arith.constant 0 : index
    %12 = vector.load %arg6[%c0_9, %c0_10] : memref<1x128xf32, #tpu.memory_space<vmem>>, vector<1x128xf32>
    %13 = vector.broadcast %12 : vector<1x128xf32> to vector<8x128xf32>
    %14 = arith.addf %11, %13 : vector<8x128xf32>
    %cst_11 = arith.constant 0.000000e+00 : f32
    %15 = vector.broadcast %cst_11 : f32 to vector<8x128xf32>
    %16 = arith.maximumf %14, %15 : vector<8x128xf32>
    %17 = arith.truncf %16 : vector<8x128xf32> to vector<8x128xbf16>
    %c0_12 = arith.constant 0 : index
    %c0_13 = arith.constant 0 : index
    %18 = vector.load %arg7[%c0_12, %c0_13] : memref<128x128xbf16, #tpu.memory_space<vmem>>, vector<128x128xbf16>
    %cst_14 = arith.constant dense<0.000000e+00> : vector<8x128xf32>
    %19 = tpu.matmul %17, %18, %cst_14 {dimension_numbers = #tpu.dot_dimension_numbers<[1], [0], [0], [1], [0, 0, 1, 1], [], []>} : vector<8x128xbf16>, vector<128x128xbf16>, vector<8x128xf32> -> vector<8x128xf32>
    %c0_15 = arith.constant 0 : index
    %c0_16 = arith.constant 0 : index
    %20 = vector.load %arg8[%c0_15, %c0_16] : memref<1x128xf32, #tpu.memory_space<vmem>>, vector<1x128xf32>
    %21 = vector.broadcast %20 : vector<1x128xf32> to vector<8x128xf32>
    %22 = arith.addf %19, %21 : vector<8x128xf32>
    %23 = vector.extract_strided_slice %22 {offsets = [0, 0], sizes = [8, 8], strides = [1, 1]} : vector<8x128xf32> to vector<8x8xf32>
    %24 = vector.extract_strided_slice %22 {offsets = [0, 8], sizes = [8, 8], strides = [1, 1]} : vector<8x128xf32> to vector<8x8xf32>
    %25 = math.tanh %24 : vector<8x8xf32>
    %cst_17 = arith.constant 1.000000e+00 : f32
    %26 = vector.broadcast %cst_17 : f32 to vector<8x8xf32>
    %27 = arith.addf %25, %26 : vector<8x8xf32>
    %cst_18 = arith.constant 1.100000e+01 : f32
    %28 = vector.broadcast %cst_18 : f32 to vector<8x8xf32>
    %29 = arith.mulf %28, %27 : vector<8x8xf32>
    %cst_19 = arith.constant -2.000000e+01 : f32
    %30 = vector.broadcast %cst_19 : f32 to vector<8x8xf32>
    %31 = arith.addf %30, %29 : vector<8x8xf32>
    %32 = math.exp %31 : vector<8x8xf32>
    %c0_20 = arith.constant 0 : index
    %c0_21 = arith.constant 0 : index
    %33 = vector.load %arg2[%c0_20, %c0_21] : memref<8x8xf32, #tpu.memory_space<vmem>>, vector<8x8xf32>
    %34 = arith.mulf %32, %33 : vector<8x8xf32>
    %35 = arith.addf %23, %34 : vector<8x8xf32>
    %36 = tpu.concatenate %23, %35 in 1 : vector<8x8xf32>, vector<8x8xf32> -> vector<8x16xf32>
    %37 = math.tanh %36 : vector<8x16xf32>
    %38 = vector.extract_strided_slice %37 {offsets = [0, 8], sizes = [8, 8], strides = [1, 1]} : vector<8x16xf32> to vector<8x8xf32>
    %39 = arith.mulf %38, %38 : vector<8x8xf32>
    %cst_22 = arith.constant 1.000000e+00 : f32
    %40 = vector.broadcast %cst_22 : f32 to vector<8x8xf32>
    %41 = arith.subf %40, %39 : vector<8x8xf32>
    %cst_23 = arith.constant 0.000000e+00 : f32
    %cst_24 = arith.constant 1.000000e+00 : f32
    %42 = vector.broadcast %cst_23 : f32 to vector<8x8xf32>
    %43 = arith.maximumf %42, %41 : vector<8x8xf32>
    %44 = vector.broadcast %cst_24 : f32 to vector<8x8xf32>
    %45 = arith.minimumf %44, %43 : vector<8x8xf32>
    %cst_25 = arith.constant -5.000000e-01 : f32
    %46 = vector.broadcast %cst_25 : f32 to vector<8x8xf32>
    %47 = arith.mulf %46, %33 : vector<8x8xf32>
    %48 = arith.mulf %47, %33 : vector<8x8xf32>
    %49 = arith.subf %48, %31 : vector<8x8xf32>
    %cst_26 = arith.constant 0.918938517 : f32
    %50 = vector.broadcast %cst_26 : f32 to vector<8x8xf32>
    %51 = arith.subf %49, %50 : vector<8x8xf32>
    %cst_27 = arith.constant 9.99999997E-7 : f32
    %52 = vector.broadcast %cst_27 : f32 to vector<8x8xf32>
    %53 = arith.addf %45, %52 : vector<8x8xf32>
    %54 = math.log %53 : vector<8x8xf32>
    %55 = arith.subf %51, %54 : vector<8x8xf32>
    %cst_28 = arith.constant dense<0.000000e+00> : vector<8xf32>
    %56 = vector.multi_reduction <add>, %55, %cst_28 [1] : vector<8x8xf32> to vector<8xf32>
    %57 = vector.shape_cast %56 : vector<8xf32> to vector<8x1xf32>
    %cst_29 = arith.constant 1.000000e+00 : f32
    %58 = vector.broadcast %cst_29 : f32 to vector<8x16xf32>
    %59 = arith.mulf %37, %58 : vector<8x16xf32>
    %60 = arith.truncf %57 : vector<8x1xf32> to vector<8x1xbf16>
    %61 = arith.extf %60 : vector<8x1xbf16> to vector<8x1xf32>
    %62 = arith.subf %57, %61 : vector<8x1xf32>
    %cst_30 = arith.constant 0.000000e+00 : f32
    %63 = vector.broadcast %cst_30 : f32 to vector<8x110xf32>
    %64 = tpu.concatenate %59, %61, %62, %63 in 1 : vector<8x16xf32>, vector<8x1xf32>, vector<8x1xf32>, vector<8x110xf32> -> vector<8x128xf32>
    %65 = arith.truncf %64 : vector<8x128xf32> to vector<8x128xbf16>
    %c0_31 = arith.constant 0 : index
    %c0_32 = arith.constant 0 : index
    %66 = vector.load %arg9[%c0_31, %c0_32] : memref<8x128xbf16, #tpu.memory_space<vmem>>, vector<8x128xbf16>
    tpu.vector_store %arg9[%c0_31, %c0_32], %65 {strides = array<i32>} : memref<8x128xbf16, #tpu.memory_space<vmem>>, vector<8x128xbf16>,
    return
  }
  func.func @transform_0(%arg0: i32) -> (i32, i32) {
    %c0_i32 = arith.constant 0 : i32
    %c0_i32_0 = arith.constant 0 : i32
    return %arg0, %c0_i32 : i32, i32
  }
  func.func @transform_1(%arg0: i32) -> (i32, i32) {
    %c0_i32 = arith.constant 0 : i32
    %c0_i32_0 = arith.constant 0 : i32
    return %arg0, %c0_i32 : i32, i32
  }
  func.func @transform_2(%arg0: i32) -> (i32, i32) {
    %c0_i32 = arith.constant 0 : i32
    %c0_i32_0 = arith.constant 0 : i32
    %c0_i32_1 = arith.constant 0 : i32
    return %c0_i32, %c0_i32_0 : i32, i32
  }
  func.func @transform_3(%arg0: i32) -> (i32, i32) {
    %c0_i32 = arith.constant 0 : i32
    %c0_i32_0 = arith.constant 0 : i32
    %c0_i32_1 = arith.constant 0 : i32
    return %c0_i32, %c0_i32_0 : i32, i32
  }
  func.func @transform_4(%arg0: i32) -> (i32, i32) {
    %c0_i32 = arith.constant 0 : i32
    %c0_i32_0 = arith.constant 0 : i32
    %c0_i32_1 = arith.constant 0 : i32
    return %c0_i32, %c0_i32_0 : i32, i32
  }
  func.func @transform_5(%arg0: i32) -> (i32, i32) {
    %c0_i32 = arith.constant 0 : i32
    %c0_i32_0 = arith.constant 0 : i32
    %c0_i32_1 = arith.constant 0 : i32
    return %c0_i32, %c0_i32_0 : i32, i32
  }
  func.func @transform_6(%arg0: i32) -> (i32, i32) {
    %c0_i32 = arith.constant 0 : i32
    %c0_i32_0 = arith.constant 0 : i32
    %c0_i32_1 = arith.constant 0 : i32
    return %c0_i32, %c0_i32_0 : i32, i32
  }
  func.func @transform_7(%arg0: i32) -> (i32, i32) {
    %c0_i32 = arith.constant 0 : i32
    %c0_i32_0 = arith.constant 0 : i32
    %c0_i32_1 = arith.constant 0 : i32
    return %c0_i32, %c0_i32_0 : i32, i32
  }
  func.func @transform_8(%arg0: i32) -> (i32, i32) {
    %c0_i32 = arith.constant 0 : i32
    %c0_i32_0 = arith.constant 0 : i32
    return %arg0, %c0_i32 : i32, i32
  }
}

</mosaic_0001>

<bundles_post_ra>
// kernel: tpu_custom_call.1
= control target key start
LH: loop header
LB: loop body
LE: loop exit
PB: predicated region body
PF: predicated region fallthrough
CT: control target
= control target key end

     0   :  { %13 = vsyncpa [#allocation3], 0  ;;  %s828_s0 = inlined_call_operand.hbm [shape: f32[8,16], index: 0, kind: input, shape index: {}]   ;;  %s829_s1 = inlined_call_operand.hbm [shape: f32[8,8], index: 1, kind: input, shape index: {}]   ;;  %s830_s2 = inlined_call_operand.hbm [shape: bf16[16,128], index: 2, kind: input, shape index: {}]   ;;  %s831_s3 = inlined_call_operand.vmem [shape: f32[1,128], index: 3, kind: input, shape index: {}]   ;;  %s832_s4 = inlined_call_operand.hbm [shape: bf16[128,128], index: 4, kind: input, shape index: {}]   ;;  %s833_s5 = inlined_call_operand.vmem [shape: f32[1,128], index: 5, kind: input, shape index: {}]   ;;  %s834_s6 = inlined_call_operand.hbm [shape: bf16[128,128], index: 6, kind: input, shape index: {}]   ;;  %s835_s7 = inlined_call_operand.vmem [shape: f32[1,128], index: 7, kind: input, shape index: {}]   ;;  %s836_s8 = inlined_call_operand.hbm [shape: bf16[8,128], index: 8, kind: output, shape index: {}]  }
   0x1   :  { %14 = vsyncpa [#allocation6], 0 }
   0x2   :  { %15 = vsyncpa [#allocation9], 0 }
   0x3   :  { %16 = vsyncpa [#allocation4], 0  ;;  %s709_s27 = smov [#allocation5]  }
   0x4   :  { %s33_s28 = sshll.u32 %s709_s27, 4  ;;  %s34_s28 = int_to_ptr.vmem [resolvable:$true] %s33_s28 }
   0x5   :  { %s589_s29 = scalar_lea.vmem %s34_s28, 128  ;;  %p594_p1 = scmp.lt.s32.totalorder %s34_s28, %s34_s28 }
   0x6   :  { %p590_p0 = scmp.ne.s32.totalorder %s34_s28, %s589_s29  ;;  %p595_p2 = scmp.lt.s32.totalorder %s589_s29, %s589_s29 }
   0x8   :  { %p596_p3 = por %p595_p2, %p594_p1 }
   0xa   :  { %p597_p4 = pnand %p596_p3, %p590_p0 }
   0xc   :  { %600 = shalt.err (!%p597_p4)
}
   0xd   :  { %36 = dma.hbm_to_vmem [thread:$0]  %s829_s1, 128, %s34_s28, [#allocation6]  }
   0xe   :  { %s710_s10 = smov [#allocation8]   ;;  %s711_s12 = smov [#allocation2]  }
   0xf   :  { %s56_s11 = sshll.u32 %s710_s10, 4  ;;  %s23_s13 = sshll.u32 %s711_s12, 4  ;;  %s57_s11 = int_to_ptr.vmem [resolvable:$true] %s56_s11  ;;  %s24_s13 = int_to_ptr.vmem [resolvable:$true] %s23_s13 }
  0x10   :  { %s609_s14 = scalar_lea.vmem %s57_s11, 1024  ;;  %p614_p6 = scmp.lt.s32.totalorder %s57_s11, %s57_s11 }
  0x11   :  { %p610_p5 = scmp.ne.s32.totalorder %s57_s11, %s609_s14  ;;  %p615_p7 = scmp.lt.s32.totalorder %s609_s14, %s609_s14 }
  0x13   :  { %p616_p8 = por %p615_p7, %p614_p6 }
  0x15   :  { %p617_p9 = pnand %p616_p8, %p610_p5 }
  0x17   :  { %620 = shalt.err (!%p617_p9)
}
  0x18   :  { %s712_s15 = smov 64   ;;  %s713_s16 = smov 4  }
  0x19   :  { %62 = dma.hbm_to_vmem [thread:$0]  %s832_s4, 1024, %s57_s11, [#allocation9], %s712_s15, %s712_s15, %s713_s16  }
  0x1a   :  { %s629_s1 = scalar_lea.vmem %s24_s13, 128  ;;  %p634_p11 = scmp.lt.s32.totalorder %s24_s13, %s24_s13 }
  0x1b   :  { %p630_p10 = scmp.ne.s32.totalorder %s24_s13, %s629_s1  ;;  %p635_p12 = scmp.lt.s32.totalorder %s629_s1, %s629_s1 }
  0x1d   :  { %p636_p13 = por %p635_p12, %p634_p11 }
  0x1f   :  { %p637_p0 = pnand %p636_p13, %p630_p10 }
  0x21   :  { %640 = shalt.err (!%p637_p0)
}
  0x22   :  { %26 = dma.hbm_to_vmem [thread:$0]  %s828_s0, 128, %s24_s13, [#allocation3]  }
  0x23   :  { %s714_s21 = smov [#allocation7]   ;;  %s715_s23 = smov [#allocation10]  }
  0x24   :  { %s42_s22 = sshll.u32 %s714_s21, 4  ;;  %s70_s24 = sshll.u32 %s715_s23, 4  ;;  %s43_s22 = int_to_ptr.vmem [resolvable:$true] %s42_s22  ;;  %s71_s24 = int_to_ptr.vmem [resolvable:$true] %s70_s24 }
  0x25   :  { %s649_s25 = scalar_lea.vmem %s43_s22, 128  ;;  %p654_p2 = scmp.lt.s32.totalorder %s43_s22, %s43_s22 }
  0x26   :  { %p650_p1 = scmp.ne.s32.totalorder %s43_s22, %s649_s25  ;;  %p655_p3 = scmp.lt.s32.totalorder %s649_s25, %s649_s25 }
  0x28   :  { %p656_p4 = por %p655_p3, %p654_p2 }
  0x2a   :  { %p657_p5 = pnand %p656_p4, %p650_p1 }
  0x2c   :  { %660 = shalt.err (!%p657_p5)
}
  0x2d   :  { %48 = dma.hbm_to_vmem [thread:$0]  %s830_s2, 128, %s43_s22, [#allocation6], %s712_s15, %s712_s15, %s713_s16  }
  0x2e   :  { %s669_s0 = scalar_lea.vmem %s71_s24, 1024  ;;  %p674_p7 = scmp.lt.s32.totalorder %s71_s24, %s71_s24 }
  0x2f   :  { %p670_p6 = scmp.ne.s32.totalorder %s71_s24, %s669_s0  ;;  %p675_p8 = scmp.lt.s32.totalorder %s669_s0, %s669_s0 }
  0x31   :  { %p676_p9 = por %p675_p8, %p674_p7 }
  0x33   :  { %p677_p10 = pnand %p676_p9, %p670_p6 }
  0x35   :  { %680 = shalt.err (!%p677_p10)
}
  0x36   :  { %76 = dma.hbm_to_vmem [thread:$0]  %s834_s6, 1024, %s71_s24, [#allocation9], %s712_s15, %s712_s15, %s713_s16  }
  0x37   :  { %701 = dma.done.wait [#allocation3], 128  }
  0x38   :  { %702 = vsyncadd [#allocation3], 4294967168 }
  0x39   :  { %703 = dma.done.wait [#allocation6], 256  }
  0x3a   :  { %704 = vsyncadd [#allocation6], 4294967040 }
  0x3b   :  { %705 = dma.done.wait [#allocation9], 2048  }
  0x3c   :  { %706 = vsyncadd [#allocation9], 4294965248  ;;  %v716_v0 = vmov 0.0   ;;  %vm717_vm0 = vmmov 0   ;;  %v556_v1 = vld [vmem:[#allocation7] sm:$0xff]   ;;  %v95_v2 = vld [vmem:[#allocation2] sm:$0xff] }
  0x3d   :  { %498 = vmatprep.subr.bf16.mxu0 %v716_v0  ;;  %500 = vmatprep.mubr.msk.bf16.mxu0 %vm717_vm0, %v716_v0  ;;  %v96_v3 = vpack.c.bf16 %v95_v2, %v95_v2  ;;  %vm112_vm1 = vcmask 130048   ;;  %v557_v4 = vld [vmem:[#allocation8 + $0x38] sm:$0xff]   ;;  %v558_v5 = vld [vmem:[#allocation8 + $0x30] sm:$0xff]   ;;  %v559_v6 = vld [vmem:[#allocation8 + $0x28] sm:$0xff]   ;;  %s718_s29 = smov 8   ;;  %vm403_vm2 = vcmask 64512  }
  0x3e   :  { %504 = vmatprep.subr.bf16.mxu1 %v716_v0  ;;  %520 = vmatprep.mubr.msk.bf16.mxu1 %vm717_vm0, %v716_v0  ;;  %v560_v7 = vld [vmem:[#allocation8 + $0x20] sm:$0xff]   ;;  %v561_v8 = vld [vmem:[#allocation8 + $0x18] sm:$0xff]   ;;  %v562_v9 = vld [vmem:[#allocation8 + $0x10] sm:$0xff]   ;;  %vm433_vm3 = vcmask 138240   ;;  %vm435_vm4 = vcmask 146432  }
  0x3f   :  { %499 = vmatpush3.bf16.msra.mxu0 %v556_v1  ;;  %505 = vmatpush3.bf16.msra.mxu1 %v557_v4  ;;  %v563_v10 = vld [vmem:[#allocation8 + $0x8] sm:$0xff]   ;;  %v564_v11 = vld [vmem:[#allocation8] sm:$0xff]   ;;  %v565_v12 = vld [vmem:[#allocation10 + $0x38] sm:$0xff]  }
  0x40   :  { %524 = vmatprep.subr.bf16.mxu0 %v716_v0  ;;  %506 = vmatprep.subr.bf16.mxu1 %v716_v0  ;;  %v566_v13 = vld [vmem:[#allocation10 + $0x30] sm:$0xff]   ;;  %v567_v14 = vld [vmem:[#allocation10 + $0x28] sm:$0xff]   ;;  %v568_v15 = vld [vmem:[#allocation10 + $0x20] sm:$0xff]  }
  0x41   :  { %v569_v16 = vld [vmem:[#allocation10 + $0x18] sm:$0xff]   ;;  %v570_v17 = vld [vmem:[#allocation10 + $0x10] sm:$0xff]   ;;  %v456_v18 = vld [vmem:[%s831_s3] ss:$0 sm:$0xff] }
  0x42   :  { %501 = vmatmul.mubr.msk.bf16.vlgmr.msra.gmra.mxu0 %vm112_vm1, %v96_v3  ;;  %v571_v26 = vld [vmem:[#allocation10 + $0x8] sm:$0xff]   ;;  %v572_v27 = vld [vmem:[#allocation10] sm:$0xff]   ;;  %v388_v28 = vld [vmem:[#allocation5] sm:$0xff] }
  0x43   :  { %540 = vmatprep.mubr.msk.bf16.mxu0 %vm717_vm0, %v716_v0  ;;  %507 = vmatpush3.bf16.msra.mxu1 %v558_v5  ;;  %v459_v29 = vld [vmem:[%s833_s5] ss:$0 sm:$0xff]  ;;  %s719_s5 = smov 120   ;;  %v410_v63 = vmul.f32 -0.5, %v388_v28 }
  0x44   :  { %508 = vmatprep.subr.bf16.mxu1 %v716_v0  ;;  %525 = vmatpush3.bf16.msra.mxu0 %v565_v12  ;;  %v468_v37 = vld [vmem:[%s835_s7] ss:$0 sm:$0xff]  ;;  %s720_s7 = smov [#allocation11]  }
  0x45   :  { %526 = vmatprep.subr.bf16.mxu0 %v716_v0  ;;  %390 = vrot.lane.b32.xlu0 %v388_v28, %s718_s29  ;;  %s445_s11 = sshll.u32 %s720_s7, 4  ;;  %s446_s11 = int_to_ptr.vmem [resolvable:$true] %s445_s11 }
  0x46   :  { %s681_s12 = scalar_lea.vmem %s446_s11, 64  ;;  %p686_p12 = scmp.lt.s32.totalorder %s446_s11, %s446_s11 }
  0x47   :  { %509 = vmatpush3.bf16.msra.mxu1 %v559_v6  ;;  %p682_p11 = scmp.ne.s32.totalorder %s446_s11, %s681_s12  ;;  %p687_p13 = scmp.lt.s32.totalorder %s681_s12, %s681_s12 }
  0x48   :  { %510 = vmatprep.subr.bf16.mxu1 %v716_v0  ;;  %527 = vmatpush3.bf16.msra.mxu0 %v566_v13 }
  0x49   :  { %528 = vmatprep.subr.bf16.mxu0 %v716_v0  ;;  %p688_p0 = por %p687_p13, %p686_p12 }
  0x4b   :  { %511 = vmatpush3.bf16.msra.mxu1 %v560_v7  ;;  %p689_p1 = pnand %p688_p0, %p682_p11 }
  0x4c   :  { %512 = vmatprep.subr.bf16.mxu1 %v716_v0  ;;  %529 = vmatpush3.bf16.msra.mxu0 %v567_v14 }
  0x4d   :  { %530 = vmatprep.subr.bf16.mxu0 %v716_v0 }
  0x4f   :  { %513 = vmatpush3.bf16.msra.mxu1 %v561_v8 }
  0x50   :  { %514 = vmatprep.subr.bf16.mxu1 %v716_v0  ;;  %531 = vmatpush3.bf16.msra.mxu0 %v568_v15 }
  0x51   :  { %532 = vmatprep.subr.bf16.mxu0 %v716_v0 }
  0x53   :  { %515 = vmatpush3.bf16.msra.mxu1 %v562_v9 }
  0x54   :  { %516 = vmatprep.subr.bf16.mxu1 %v716_v0  ;;  %533 = vmatpush3.bf16.msra.mxu0 %v569_v16 }
  0x55   :  { %534 = vmatprep.subr.bf16.mxu0 %v716_v0 }
  0x57   :  { %517 = vmatpush3.bf16.msra.mxu1 %v563_v10 }
  0x58   :  { %518 = vmatprep.subr.bf16.mxu1 %v716_v0  ;;  %535 = vmatpush3.bf16.msra.mxu0 %v570_v17 }
  0x59   :  { %536 = vmatprep.subr.bf16.mxu0 %v716_v0 }
  0x5b   :  { %519 = vmatpush3.bf16.msra.mxu1 %v564_v11 }
  0x5c   :  { %537 = vmatpush3.bf16.msra.mxu0 %v571_v26 }
  0x5d   :  { %538 = vmatprep.subr.bf16.mxu0 %v716_v0  ;;  %v411_v0 = vmul.f32 %v410_v63, %v388_v28 }
  0x60   :  { %539 = vmatpush3.bf16.msra.mxu0 %v572_v27 }
  0xb7   :  { %v391_v48 = vpop.permute.xlu0 %390 }
 0x102   :  { %v150_v19 = vpop.f32.mrf.mxu0 }
 0x103   :  { %v151_v20 = vadd.f32 %v456_v18, %v150_v19 }
 0x104   :  { %v502_v21 = vpop.f32.mrf.mxu0 }
 0x105   :  { %v156_v22 = vmax.f32 %v151_v20, 0.0 }
 0x106   :  { %v153_v23 = vpop.f32.mrf.mxu0 }
 0x107   :  { %v157_v24 = vpack.c.bf16 %v156_v22, %v156_v22 }
 0x108   :  { %v503_v25 = vpop.f32.mrf.mxu0 }
 0x109   :  { %521 = vmatmul.mubr.bf16.vlgmr.msra.gmra.mxu1 %v157_v24 }
 0x1c9   :  { %v263_v30 = vpop.f32.mrf.mxu1 }
 0x1ca   :  { %v264_v31 = vadd.f32 %v459_v29, %v263_v30 }
 0x1cb   :  { %v522_v32 = vpop.f32.mrf.mxu1 }
 0x1cc   :  { %v269_v33 = vmax.f32 %v264_v31, 0.0 }
 0x1cd   :  { %v266_v34 = vpop.f32.mrf.mxu1 }
 0x1ce   :  { %v270_v35 = vpack.c.bf16 %v269_v33, %v269_v33 }
 0x1cf   :  { %v523_v36 = vpop.f32.mrf.mxu1 }
 0x1d0   :  { %541 = vmatmul.mubr.bf16.vlgmr.msra.gmra.mxu0 %v270_v35 }
 0x290   :  { %v376_v38 = vpop.f32.mrf.mxu0 }
 0x291   :  { %v377_v39 = vadd.f32 %v468_v37, %v376_v38 }
 0x292   :  { %v542_v40 = vpop.f32.mrf.mxu0 }
 0x293   :  { %573 = vtanh.f32 %v377_v39 }
 0x294   :  { %v379_v41 = vpop.f32.mrf.mxu0 }
 0x296   :  { %v543_v42 = vpop.f32.mrf.mxu0 }
 0x2a0   :  { %v574_v43 = vpop.eup %573 }
 0x2a1   :  { %v383_v44 = vadd.f32 1.0, %v574_v43 }
 0x2a3   :  { %v384_v45 = vmul.f32 11.0, %v383_v44 }
 0x2a5   :  { %v385_v46 = vadd.f32 -20.0, %v384_v45 }
 0x2a7   :  { %v386_v47 = vmul.f32 1.442695, %v385_v46 }
 0x2a9   :  { %575 = vpow2.f32 %v386_v47 }
 0x2b6   :  { %v576_v49 = vpop.eup %575 }
 0x2b7   :  { %v393_v50 = vmul.f32 %v576_v49, %v391_v48 }
 0x2b9   :  { %395 = vrot.lane.b32.xlu0 %v393_v50, %s719_s5 }
 0x32b   :  { %v396_v51 = vpop.permute.xlu0 %395 }
 0x32c   :  { %v398_v52 = vadd.f32 %v396_v51, %v377_v39 }
 0x32e   :  { %400 = vrot.lane.b32.xlu1 %v398_v52, %s718_s29 }
 0x332   :  { %413 = vrot.lane.b32.xlu1 %v385_v46, %s719_s5 }
 0x3a0   :  { %v401_v53 = vpop.permute.xlu1 %400 }
 0x3a1   :  { %v404_v54 = vsel %vm403_vm2, %v377_v39, %v401_v53 }
 0x3a2   :  { %577 = vtanh.f32 %v404_v54 }
 0x3a4   :  { %v414_v1 = vpop.permute.xlu1 %413 }
 0x3a5   :  { %v416_v2 = vsub.f32 %v411_v0, %v414_v1 }
 0x3a7   :  { %v477_v3 = vadd.f32 -0.9189385, %v416_v2 }
 0x3af   :  { %v578_v55 = vpop.eup %577 }
 0x3b0   :  { %v406_v56 = vmul.f32 %v578_v55, %v578_v55 }
 0x3b2   :  { %v407_v57 = vsub.f32 1.0, %v406_v56 }
 0x3b4   :  { %v408_v58 = vmax.f32 %v407_v57, 0.0 }
 0x3b6   :  { %v409_v59 = vmin.f32 %v408_v58, 1.0 }
 0x3b8   :  { %v418_v60 = vadd.f32 1e-06, %v409_v59 }
 0x3ba   :  { %579 = vlog2.f32 %v418_v60 }
 0x3c7   :  { %v580_v61 = vpop.eup %579 }
 0x3c8   :  { %v420_v62 = vmul.f32 0.6931472, %v580_v61 }
 0x3ca   :  { %422 = vrot.lane.b32.xlu0 %v420_v62, %s719_s5 }
 0x43c   :  { %v423_v4 = vpop.permute.xlu0 %422 }
 0x43d   :  { %v425_v5 = vsub.f32 %v477_v3, %v423_v4 }
 0x43f   :  { %v426_v6 = vsel %vm403_vm2, %v425_v5, 0.0 }
 0x440   :  { %427 = vadd.xlane.f32.xlu1 %v426_v6 }
 0x4c9   :  { %v428_v7 = vpop.xlane.xlu1 %427 }
 0x4ca   :  { %v429_v8 = vpack.c.bf16 %v428_v7, %v428_v7 }
 0x4cc   :  { %v430_v9 = vunpack.c.l.bf16 %v429_v8 }
 0x4ce   :  { %v431_v10 = vsub.f32 %v428_v7, %v430_v9  ;;  %v432_v11 = vsel %vm112_vm1, %v578_v55, %v430_v9 }
 0x4d0   :  { %v434_v12 = vsel %vm433_vm3, %v432_v11, %v431_v10 }
 0x4d1   :  { %v436_v13 = vsel %vm435_vm4, %v434_v12, 0.0 }
 0x4d2   :  { %v437_v14 = vpack.c.bf16 %v436_v13, %v436_v13 }
 0x4d4   :  { %438 = vst [vmem:[#allocation11] sm:$0xf] %v437_v14 }
 0x4d5   :  { %692 = shalt.err (!%p689_p1)
}
 0x4d6   :  { %448 = dma.vmem_to_hbm [thread:$0]  %s446_s11, 64, %s836_s8, [#allocation4]  }
 0x4d7   :  { %707 = dma.done.wait [#allocation4], 64  }
 0x4d8   :  { %708 = vsyncadd [#allocation4], 4294967232 }
 0x4d9   :  { %452 = vsyncpa [#allocation3], 1 }
 0x4da   :  { %453 = vsyncpa [#allocation6], 1 }
 0x4db   :  { %454 = vsyncpa [#allocation9], 1 }
 0x4dc   :  { %455 = vsyncpa [#allocation4], 1 }

</bundles_post_ra>
